<compile_context>
chip_gen: v6e
topology: v6e:2x2x1
jax: 0.10.0
libtpu: 0.0.40
codegen_flags: <defaults>
</compile_context>

<pallas_src>
import functools
import math

import jax
import jax.numpy as jnp
import numpy as np
from jax import lax
from jax.experimental import pallas as pl
from jax.experimental.pallas import tpu as pltpu


def _channel_attention_kernel(a_ref, c2_ref, x_ref, o_ref, sum_acc, max_acc,
                              *, hw_total, hw_tile, mask_tail):
    # a_ref:  (1, C, 1)  folded affine weights (VMEM, resident)
    # c2_ref: (1,)       folded bias * 2       (SMEM scalar)
    # x_ref:  (Bt, C, hw_tile) input block
    # o_ref:  (Bt, 1, 1) output block (resident across the reduction axis)
    k = pl.program_id(1)

    @pl.when(k == 0)
    def _init():
        sum_acc[...] = jnp.zeros_like(sum_acc)
        max_acc[...] = jnp.full_like(max_acc, -jnp.inf)

    xs = x_ref[...].astype(jnp.float32)                       # upcast in VMEM, not HBM
    if mask_tail:
        col = k * hw_tile + lax.broadcasted_iota(jnp.int32, xs.shape, 2)
        valid = col < hw_total
        xs_sum = jnp.where(valid, xs, 0.0)
        xs_max = jnp.where(valid, xs, -jnp.inf)
    else:
        xs_sum = xs
        xs_max = xs

    # Fused per-channel reductions over the lane (H*W) axis; accumulators keep
    # C on sublanes (keepdims) so no cross-layout reshuffle per step.
    sum_acc[...] += jnp.sum(xs_sum, axis=-1, keepdims=True)
    max_acc[...] = jnp.maximum(max_acc[...], jnp.max(xs_max, axis=-1, keepdims=True))

    @pl.when(k == pl.num_programs(1) - 1)
    def _finalize():
        pooled = sum_acc[...] * (1.0 / hw_total) + max_acc[...]     # (Bt, C, 1) = avg + max
        val = jnp.sum(a_ref[...] * pooled, axis=1, keepdims=True)   # (Bt, 1, 1)
        o_ref[...] = jax.nn.sigmoid(val + c2_ref[0]).astype(o_ref.dtype)


def _pick_tiles(B, C, HW, itemsize):
    # Batch block: amortize the ~0.35us/step overhead, but keep >=2 batch grid
    # blocks when possible so the "parallel" axis can feed both v7x TensorCores.
    bt = min(B, 8)
    if B >= 2 and -(-B // bt) < 2:
        bt = max(1, (B + 1) // 2)
    # H*W tile: ~2 MiB per input block; with double buffering that stays far
    # under the scoped VMEM limits of every generation (incl. v7x's 64 MiB).
    target_bytes = 2 * 1024 * 1024
    max_hw = max(128, target_bytes // max(1, bt * C * itemsize))
    if HW <= max_hw:
        hw_tile = HW                                  # full extent, no lane constraint
    else:
        hw_tile = max(128, (max_hw // 128) * 128)     # multiple of 128, tail masked
    return bt, hw_tile


def channel_attention(x, params):
    """x: (B, C, H, W), NCHW. Returns (B, 1, 1, 1) like the PyTorch module."""
    B, C, H, W = x.shape
    HW = H * W
    w1, b1, w2, b2, w3, b3 = params
    mid = w1.shape[0]
    hp = lax.Precision.HIGHEST

    # Fold the affine conv chain (valid because convBlock has no nonlinearity):
    #   convBlock(v) = w3 @ (w2_center @ (w1 @ v + b1) + b2) + b3 = A v + c
    w1_m = w1.reshape(mid, C).astype(jnp.float32)         # 1x1 conv
    w2_m = w2[:, :, 1, 1].astype(jnp.float32)             # center tap of 3x3 (pad=1, 1x1 input)
    w3_m = w3.reshape(1, mid).astype(jnp.float32)         # 1x1 conv -> 1 channel
    b1_c = b1.astype(jnp.float32).reshape(mid, 1)
    b2_c = b2.astype(jnp.float32).reshape(mid, 1)
    b3_c = b3.astype(jnp.float32).reshape(1, 1)
    a_vec = jnp.dot(jnp.dot(w3_m, w2_m, precision=hp), w1_m, precision=hp)       # (1, C)
    c_val = jnp.dot(w3_m, jnp.dot(w2_m, b1_c, precision=hp) + b2_c,
                    precision=hp) + b3_c                                          # (1, 1)
    a3 = a_vec.reshape(1, C, 1)
    c2 = (2.0 * c_val).reshape(1)          # bias from outAvg + outMax

    x_flat = x.reshape(B, C, HW)           # keep native dtype: HBM traffic stays narrow

    bt, hw_tile = _pick_tiles(B, C, HW, x_flat.dtype.itemsize)
    grid_b = -(-B // bt)
    grid_k = -(-HW // hw_tile)
    mask_tail = (HW % hw_tile) != 0

    kernel = functools.partial(_channel_attention_kernel,
                               hw_total=HW, hw_tile=hw_tile, mask_tail=mask_tail)

    in_block_bytes = bt * C * hw_tile * x_flat.dtype.itemsize
    vmem_limit = int(min(100 * 1024 * 1024,
                         max(32 * 1024 * 1024, 4 * in_block_bytes)))

    out = pl.pallas_call(
        kernel,
        out_shape=jax.ShapeDtypeStruct((B, 1, 1), jnp.float32),
        grid_spec=pltpu.PrefetchScalarGridSpec(
            num_scalar_prefetch=0,
            grid=(grid_b, grid_k),
            in_specs=[
                pl.BlockSpec((1, C, 1), lambda b, k: (0, 0, 0)),         # folded weights
                pl.BlockSpec(memory_space=pltpu.MemorySpace.SMEM),       # folded bias scalar
                pl.BlockSpec((bt, C, hw_tile), lambda b, k: (b, 0, k)),  # x stream
            ],
            out_specs=pl.BlockSpec((bt, 1, 1), lambda b, k: (b, 0, 0)),
            scratch_shapes=[
                pltpu.VMEM((bt, C, 1), jnp.float32),   # running sum
                pltpu.VMEM((bt, C, 1), jnp.float32),   # running max
            ],
        ),
        compiler_params=pltpu.CompilerParams(
            dimension_semantics=("parallel", "arbitrary"),
            vmem_limit_bytes=vmem_limit),
    )(a3, c2, x_flat)

    return out.reshape(B, 1, 1, 1)


def ref_forward(x, params):
    """Pure-JAX reference mirroring the PyTorch forward (real convs, NCHW)."""
    w1, b1, w2, b2, w3, b3 = params
    dn = ("NCHW", "OIHW", "NCHW")
    hp = lax.Precision.HIGHEST
    xf = x.astype(jnp.float32)
    avg = jnp.mean(xf, axis=(-1, -2), keepdims=True)
    mx = jnp.max(xf.reshape(xf.shape[0], xf.shape[1], -1), axis=2)
    mx = mx.reshape(xf.shape[0], xf.shape[1], 1, 1)

    def conv_block(v):
        h = lax.conv_general_dilated(v, w1, (1, 1), "VALID", dimension_numbers=dn,
                                     precision=hp) + b1.reshape(1, -1, 1, 1)
        h = lax.conv_general_dilated(h, w2, (1, 1), ((1, 1), (1, 1)), dimension_numbers=dn,
                                     precision=hp) + b2.reshape(1, -1, 1, 1)
        h = lax.conv_general_dilated(h, w3, (1, 1), "VALID", dimension_numbers=dn,
                                     precision=hp) + b3.reshape(1, -1, 1, 1)
        return h

    return jax.nn.sigmoid(conv_block(avg) + conv_block(mx))


if __name__ == "__main__":
    # in_channels=32 so mid = ceil(32 // 16) = 2 >= 1 (channels=4 would give a
    # 0-channel conv in the original module).
    B, C, H, W = 2, 32, 16, 16
    mid = math.ceil(C // 16)

    key = jax.random.PRNGKey(0)
    ks = jax.random.split(key, 7)
    x = jax.random.normal(ks[0], (B, C, H, W), jnp.float32)
    w1 = jax.random.normal(ks[1], (mid, C, 1, 1), jnp.float32) * 0.1
    b1 = jax.random.normal(ks[2], (mid,), jnp.float32) * 0.1
    w2 = jax.random.normal(ks[3], (mid, mid, 3, 3), jnp.float32) * 0.1
    b2 = jax.random.normal(ks[4], (mid,), jnp.float32) * 0.1
    w3 = jax.random.normal(ks[5], (1, mid, 1, 1), jnp.float32) * 0.1
    b3 = jax.random.normal(ks[6], (1,), jnp.float32) * 0.1
    params = (w1, b1, w2, b2, w3, b3)

    out = jax.block_until_ready(channel_attention(x, params))
    ref = jax.block_until_ready(ref_forward(x, params))
    np.testing.assert_allclose(np.asarray(out), np.asarray(ref), rtol=1e-5, atol=1e-5)
    assert out.shape == (B, 1, 1, 1)
    print("KERNEL_OK")
</pallas_src>

<mosaic_0001>
module attributes {stable_mosaic.version = 11 : i64} {
  func.func @_channel_attention_kernel(%arg0: i32, %arg1: i32, %arg2: memref<1x32x1xf32, #tpu.memory_space<vmem>>, %arg3: memref<1xf32, #tpu.memory_space<smem>>, %arg4: memref<1x32x256xf32, #tpu.memory_space<vmem>>, %arg5: memref<1x1x1xf32, #tpu.memory_space<vmem>>, %arg6: memref<1x32x1xf32, #tpu.memory_space<vmem>>, %arg7: memref<1x32x1xf32, #tpu.memory_space<vmem>>) attributes {dimension_semantics = [#tpu.dimension_semantics<parallel>, #tpu.dimension_semantics<arbitrary>], iteration_bounds = array<i64: 2, 1>, scalar_prefetch = 0 : i64, scratch_operands = 2 : i64, tpu.core_type = #tpu.core_type<tc>, window_params = [{pipeline_mode = #tpu.pipeline_mode<synchronous>, transform_indices = @transform_0, window_bounds = array<i64: 1, 32, 1>}, {transform_indices = @transform_1, window_bounds = array<i64: 1>}, {transform_indices = @transform_2, window_bounds = array<i64: 1, 32, 256>}, {transform_indices = @transform_3, window_bounds = array<i64: 1, 1, 1>}]} {
    %c0_i32 = arith.constant 0 : i32
    %0 = arith.cmpi eq, %arg1, %c0_i32 : i32
    %1 = arith.extui %0 : i1 to i32
    %c0_i32_0 = arith.constant 0 : i32
    %2 = arith.cmpi ne, %1, %c0_i32_0 : i32
    scf.if %2 {
      %cst_18 = arith.constant 0.000000e+00 : f32
      %17 = vector.broadcast %cst_18 : f32 to vector<1x32x1xf32>
      %c0_19 = arith.constant 0 : index
      %c0_20 = arith.constant 0 : index
      %c0_21 = arith.constant 0 : index
      %18 = vector.load %arg6[%c0_19, %c0_20, %c0_21] : memref<1x32x1xf32, #tpu.memory_space<vmem>>, vector<1x32x1xf32>
      tpu.vector_store %arg6[%c0_19, %c0_20, %c0_21], %17 {strides = array<i32>} : memref<1x32x1xf32, #tpu.memory_space<vmem>>, vector<1x32x1xf32>,
      %cst_22 = arith.constant 0xFF800000 : f32
      %19 = vector.broadcast %cst_22 : f32 to vector<1x32x1xf32>
      %c0_23 = arith.constant 0 : index
      %c0_24 = arith.constant 0 : index
      %c0_25 = arith.constant 0 : index
      %20 = vector.load %arg7[%c0_23, %c0_24, %c0_25] : memref<1x32x1xf32, #tpu.memory_space<vmem>>, vector<1x32x1xf32>
      tpu.vector_store %arg7[%c0_23, %c0_24, %c0_25], %19 {strides = array<i32>} : memref<1x32x1xf32, #tpu.memory_space<vmem>>, vector<1x32x1xf32>,
    } else {
    }
    %c0 = arith.constant 0 : index
    %c0_1 = arith.constant 0 : index
    %c0_2 = arith.constant 0 : index
    %3 = vector.load %arg4[%c0, %c0_1, %c0_2] : memref<1x32x256xf32, #tpu.memory_space<vmem>>, vector<1x32x256xf32>
    %c0_3 = arith.constant 0 : index
    %c0_4 = arith.constant 0 : index
    %c0_5 = arith.constant 0 : index
    %4 = vector.load %arg6[%c0_3, %c0_4, %c0_5] : memref<1x32x1xf32, #tpu.memory_space<vmem>>, vector<1x32x1xf32>
    %cst = arith.constant dense<0.000000e+00> : vector<1x32xf32>
    %5 = vector.multi_reduction <add>, %3, %cst [2] : vector<1x32x256xf32> to vector<1x32xf32>
    %6 = vector.shape_cast %5 : vector<1x32xf32> to vector<1x32x1xf32>
    %7 = arith.addf %4, %6 : vector<1x32x1xf32>
    %c0_6 = arith.constant 0 : index
    %c0_7 = arith.constant 0 : index
    %c0_8 = arith.constant 0 : index
    %8 = vector.load %arg6[%c0_6, %c0_7, %c0_8] : memref<1x32x1xf32, #tpu.memory_space<vmem>>, vector<1x32x1xf32>
    tpu.vector_store %arg6[%c0_6, %c0_7, %c0_8], %7 {strides = array<i32>} : memref<1x32x1xf32, #tpu.memory_space<vmem>>, vector<1x32x1xf32>,
    %c0_9 = arith.constant 0 : index
    %c0_10 = arith.constant 0 : index
    %c0_11 = arith.constant 0 : index
    %9 = vector.load %arg7[%c0_9, %c0_10, %c0_11] : memref<1x32x1xf32, #tpu.memory_space<vmem>>, vector<1x32x1xf32>
    %cst_12 = arith.constant dense<0xFF800000> : vector<1x32xf32>
    %10 = vector.multi_reduction <maximumf>, %3, %cst_12 [2] : vector<1x32x256xf32> to vector<1x32xf32>
    %11 = vector.shape_cast %10 : vector<1x32xf32> to vector<1x32x1xf32>
    %12 = arith.maximumf %9, %11 : vector<1x32x1xf32>
    %c0_13 = arith.constant 0 : index
    %c0_14 = arith.constant 0 : index
    %c0_15 = arith.constant 0 : index
    %13 = vector.load %arg7[%c0_13, %c0_14, %c0_15] : memref<1x32x1xf32, #tpu.memory_space<vmem>>, vector<1x32x1xf32>
    tpu.vector_store %arg7[%c0_13, %c0_14, %c0_15], %12 {strides = array<i32>} : memref<1x32x1xf32, #tpu.memory_space<vmem>>, vector<1x32x1xf32>,
    %c0_i32_16 = arith.constant 0 : i32
    %14 = arith.cmpi eq, %arg1, %c0_i32_16 : i32
    %15 = arith.extui %14 : i1 to i32
    %c0_i32_17 = arith.constant 0 : i32
    %16 = arith.cmpi ne, %15, %c0_i32_17 : i32
    scf.if %16 {
      %c0_18 = arith.constant 0 : index
      %c0_19 = arith.constant 0 : index
      %c0_20 = arith.constant 0 : index
      %17 = vector.load %arg6[%c0_18, %c0_19, %c0_20] : memref<1x32x1xf32, #tpu.memory_space<vmem>>, vector<1x32x1xf32>
      %cst_21 = arith.constant 3.906250e-03 : f32
      %18 = vector.broadcast %cst_21 : f32 to vector<1x32x1xf32>
      %19 = arith.mulf %17, %18 : vector<1x32x1xf32>
      %c0_22 = arith.constant 0 : index
      %c0_23 = arith.constant 0 : index
      %c0_24 = arith.constant 0 : index
      %20 = vector.load %arg7[%c0_22, %c0_23, %c0_24] : memref<1x32x1xf32, #tpu.memory_space<vmem>>, vector<1x32x1xf32>
      %21 = arith.addf %19, %20 : vector<1x32x1xf32>
      %c0_25 = arith.constant 0 : index
      %c0_26 = arith.constant 0 : index
      %c0_27 = arith.constant 0 : index
      %22 = vector.load %arg2[%c0_25, %c0_26, %c0_27] : memref<1x32x1xf32, #tpu.memory_space<vmem>>, vector<1x32x1xf32>
      %23 = arith.mulf %22, %21 : vector<1x32x1xf32>
      %cst_28 = arith.constant dense<0.000000e+00> : vector<1x1xf32>
      %24 = vector.multi_reduction <add>, %23, %cst_28 [1] : vector<1x32x1xf32> to vector<1x1xf32>
      %25 = vector.shape_cast %24 : vector<1x1xf32> to vector<1x1x1xf32>
      %c0_29 = arith.constant 0 : index
      %26 = memref.load %arg3[%c0_29] : memref<1xf32, #tpu.memory_space<smem>>
      %27 = vector.broadcast %26 : f32 to vector<1x1x1xf32>
      %28 = arith.addf %25, %27 : vector<1x1x1xf32>
      %29 = arith.negf %28 : vector<1x1x1xf32>
      %30 = math.exp %29 : vector<1x1x1xf32>
      %cst_30 = arith.constant 1.000000e+00 : f32
      %31 = vector.broadcast %cst_30 : f32 to vector<1x1x1xf32>
      %32 = arith.addf %31, %30 : vector<1x1x1xf32>
      %33 = arith.divf %31, %32 : vector<1x1x1xf32>
      %c0_31 = arith.constant 0 : index
      %c0_32 = arith.constant 0 : index
      %c0_33 = arith.constant 0 : index
      %34 = vector.load %arg5[%c0_31, %c0_32, %c0_33] : memref<1x1x1xf32, #tpu.memory_space<vmem>>, vector<1x1x1xf32>
      tpu.vector_store %arg5[%c0_31, %c0_32, %c0_33], %33 {strides = array<i32>} : memref<1x1x1xf32, #tpu.memory_space<vmem>>, vector<1x1x1xf32>,
    } else {
    }
    return
  }
  func.func @transform_0(%arg0: i32, %arg1: i32) -> (i32, i32, i32) {
    %c0_i32 = arith.constant 0 : i32
    %c0_i32_0 = arith.constant 0 : i32
    %c0_i32_1 = arith.constant 0 : i32
    %c0_i32_2 = arith.constant 0 : i32
    return %c0_i32, %c0_i32_0, %c0_i32_1 : i32, i32, i32
  }
  func.func @transform_1(%arg0: i32, %arg1: i32) -> i32 {
    %c0_i32 = arith.constant 0 : i32
    %c0_i32_0 = arith.constant 0 : i32
    return %c0_i32 : i32
  }
  func.func @transform_2(%arg0: i32, %arg1: i32) -> (i32, i32, i32) {
    %c0_i32 = arith.constant 0 : i32
    %c0_i32_0 = arith.constant 0 : i32
    return %arg0, %c0_i32, %arg1 : i32, i32, i32
  }
  func.func @transform_3(%arg0: i32, %arg1: i32) -> (i32, i32, i32) {
    %c0_i32 = arith.constant 0 : i32
    %c0_i32_0 = arith.constant 0 : i32
    %c0_i32_1 = arith.constant 0 : i32
    return %arg0, %c0_i32, %c0_i32_0 : i32, i32, i32
  }
}

</mosaic_0001>

<bundles_post_ra>
// kernel: tpu_custom_call.1
= control target key start
LH: loop header
LB: loop body
LE: loop exit
PB: predicated region body
PF: predicated region fallthrough
CT: control target
= control target key end

     0   :  { %s708_s0 = inlined_call_operand.vmem [shape: f32[1,32,1], index: 0, kind: input, shape index: {}]   ;;  %s709_s1 = inlined_call_operand.<no memory space> [shape: f32[1], index: 1, kind: input, shape index: {}]   ;;  %s710_s2 = inlined_call_operand.hbm [shape: f32[2,32,256], index: 2, kind: input, shape index: {}]   ;;  %s711_s3 = inlined_call_operand.vmem [shape: f32[2,1,1], index: 3, kind: output, shape index: {}]  }
   0x1   :  { %8 = sst [smem:[#allocation4]] %s709_s1 }
   0x2   :  { %9 = vsyncpa [#allocation6], 0 }
   0x3   :  { %11 = vsyncpa [#allocation6 + $0x1], 0  ;;  %s580_s14 = smov 0   ;;  %s582_s15 = smov 0  }
   0x4   :  { %s584_s16 = smov 0   ;;  %s586_s17 = smov 0  }
   0x5   :  { %s588_s18 = smov 0   ;;  %s590_s19 = smov 0  }
   0x6 LB: > { %s396_s1 = sadd.s32 4294967295, %s550_s19   ;;  %s29_s20 = sadd.s32 1, %s546_s18  ;;  %s550_s19 = sphi %s590_s19, %s17_s19   ;;  %s546_s18 = sphi %s588_s18, %s719_s18   ;;  %s542_s17 = sphi %s586_s17, %s718_s17   ;;  %s538_s16 = sphi %s584_s16, %s717_s16   ;;  %s534_s15 = sphi %s582_s15, %s716_s15   ;;  %s530_s14 = sphi %s580_s14, %s715_s14  }
   0x7   : > { %p31_p0 = scmp.ge.s32.totalorder %s29_s20, 2  ;;  %s80_s21 = sadd.s32 1, %s538_s16 }
   0x8   : > { %p87_p1 = scmp.ne.s32.totalorder %s538_s16, %s534_s15  ;;  %p88_p2 = scmp.eq.s32.totalorder %s550_s19, 0 }
   0x9   : > { %s721_s20 = smov (%p31_p0, %s29_s20), 0  ;;  %p93_p4 = scmp.ne.s32.totalorder %s534_s15, %s530_s14 }
   0xa   : > { %p616_p3 = por %p88_p2, %p87_p1  ;;  %s75_s23 = ssub.s32 %s546_s18, %s721_s20 }
   0xb   : > { %p94_p5 = scmp.eq.s32.totalorder %s396_s1, 0  ;;  %p78_p6 = scmp.eq.s32.totalorder %s75_s23, 0 }
   0xc   : > { %p415_p8 = scmp.lt.s32.totalorder %s550_s19, 2  ;;  %s149_s26 = sand.u32 1, %s538_s16  }
   0xd   : > { %p623_p7 = por %p94_p5, %p93_p4  ;;  %s408_s27 = sshll.u32 %s546_s18, 10 }
   0xe   : > { %s629_s25 = scalar_select %p78_p6, %s538_s16, %s80_s21  }
   0xf   : > { %s400_s28 = sshll.u32 %s149_s26, 6  ;;  %s161_s4 = scalar_lea.hbm %s710_s2, %s408_s27 }
  0x10   : > { %s153_s5 = scalar_lea.vmem [#allocation5], %s400_s28  ;;  %p638_p9 = pnand %p415_p8, %p616_p3 }
  0x11   : > { %s162_s6 = sshll.u32 %s153_s5, 4  ;;  %s150_s8 = scalar_lea.sflag [#allocation6], %s149_s26  ;;  %s163_s6 = int_to_ptr.vmem [resolvable:$true] %s162_s6 }
  0x12   : > { %p474_p10 = pneg %p638_p9  ;;  %s485_s9 = scalar_lea.vmem %s163_s6, 1024 }
  0x13   : > { %p486_p11 = scmp.ne.s32.totalorder %s163_s6, %s485_s9  ;;  %s552_s10 = smov [#allocation5]  }
  0x14   : > { %s490_s11 = sshll.u32 %s552_s10, 4  ;;  %s491_s11 = int_to_ptr.vmem [resolvable:$false] %s490_s11 }
  0x15   : > { %p488_p12 = pnand %p486_p11, %p474_p10  ;;  %s492_s12 = scalar_lea.vmem %s491_s11, 2048 }
  0x16   : > { %p493_p0 = scmp.lt.s32.totalorder %s163_s6, %s491_s11  ;;  %p494_p1 = scmp.lt.s32.totalorder %s492_s12, %s485_s9 }
  0x17   : > { %p489_p13 = pneg %p488_p12 }
  0x18   : > { %p495_p2 = por %p494_p1, %p493_p0 }
  0x1a   : > { %p496_p3 = pnand %p495_p2, %p489_p13 }
  0x1c   : > { %499 = shalt.err (!%p496_p3)
}
  0x1d   : > { %s553_s13 = smov 256   ;;  %s554_s14 = smov 16  }
  0x1e   : > { %414 = dma.hbm_to_vmem [thread:$0]  (!%p638_p9), %s161_s4, 1024, %s163_s6, %s150_s8, %s553_s13, %s553_s13, %s554_s14  }
  0x1f   : > { %p403_p4 = scmp.ge.s32.totalorder %s550_s19, 1  ;;  %p170_p5 = scmp.lt.s32.totalorder %s550_s19, 3 }
  0x21   : > { %p171_p6 = pnand %p403_p4, %p170_p5 }
  0x22   : > { %s176_s1 = sand.u32 (!%p171_p6), 1, %s534_s15  }
  0x23   : > { %174 = sbr.rel (%p171_p6) target bundleno = 261 (0x105), region = 32  ;;  %s404_s21 = sshll.u32 (!%p171_p6), %s176_s1, 6 }
  0x24   : > { %s177_s22 = scalar_lea.sflag (!%p171_p6), [#allocation6], %s176_s1  ;;  %s180_s23 = scalar_lea.vmem (!%p171_p6), [#allocation5], %s404_s21 }
  0x28   : > { %525 = dma.done.wait (%p623_p7), %s177_s22, 1024  }
  0x29   : > { %527 = vsyncadd (%p623_p7), %s177_s22, 4294966272  ;;  %vm209_vm0 = vcmask 7168   ;;  %v555_v0 = vmov 0.0   ;;  %v222_v1 = vld [vmem:[%s180_s23 + $0x20] sm:$0xff]  ;;  %v223_v2 = vld [vmem:[%s180_s23 + $0x28] sm:$0xff]  ;;  %v556_v15 = vmov -inf  }
  0x2a   : > { %212 = vst.msk [vmem:[#allocation2 + $0x10] sm:$0xff] %vm209_vm0, %v555_v0  ;;  %210 = vst.msk [vmem:[#allocation2] sm:$0xff] %vm209_vm0, %v555_v0  ;;  %v218_v3 = vld [vmem:[%s180_s23] sm:$0xff]  ;;  %v236_v4 = vadd.f32 %v223_v2, %v222_v1  ;;  %v219_v5 = vld [vmem:[%s180_s23 + $0x8] sm:$0xff]  ;;  %v261_v17 = vmax.f32 %v222_v1, %v223_v2  ;;  %s315_s6 = sld [smem:[#allocation4]]  ;;  %p202_p7 = scmp.lt.s32.totalorder %s542_s17, 1 }
  0x2b   : > { %211 = vst.msk [vmem:[#allocation2 + $0x8] sm:$0xff] %vm209_vm0, %v555_v0  ;;  %213 = vst.msk [vmem:[#allocation2 + $0x18] sm:$0xff] %vm209_vm0, %v555_v0  ;;  %v220_v6 = vld [vmem:[%s180_s23 + $0x10] sm:$0xff]  ;;  %v221_v7 = vld [vmem:[%s180_s23 + $0x18] sm:$0xff]  ;;  %v230_v8 = vadd.f32 %v219_v5, %v218_v3  ;;  %v255_v9 = vmax.f32 %v218_v3, %v219_v5  ;;  %vm324_vm1 = vcmask 0  }
  0x2c   : > { %237 = vadd.xlane.f32.xlu1 %v236_v4  ;;  %v233_v10 = vadd.f32 %v221_v7, %v220_v6  ;;  %v224_v11 = vld [vmem:[%s180_s23 + $0x30] sm:$0xff]  ;;  %v225_v12 = vld [vmem:[%s180_s23 + $0x38] sm:$0xff]  ;;  %v258_v14 = vmax.f32 %v220_v6, %v221_v7  ;;  %214 = vst.msk [vmem:[#allocation3] sm:$0xff] %vm209_vm0, %v556_v15  ;;  %215 = vst.msk [vmem:[#allocation3 + $0x8] sm:$0xff] %vm209_vm0, %v556_v15  ;;  %s723_s17 = smov (!%p202_p7, %s542_s17), 1 }
  0x2d   : > { %231 = vadd.xlane.f32.xlu0 %v230_v8  ;;  %v239_v13 = vadd.f32 %v225_v12, %v224_v11  ;;  %216 = vst.msk [vmem:[#allocation3 + $0x10] sm:$0xff] %vm209_vm0, %v556_v15  ;;  %217 = vst.msk [vmem:[#allocation3 + $0x18] sm:$0xff] %vm209_vm0, %v556_v15  ;;  %v264_v16 = vmax.f32 %v224_v11, %v225_v12  ;;  %v294_v46 = vld [vmem:[%s708_s0] sm:$0xff]  ;;  %v295_v52 = vld [vmem:[%s708_s0 + $0x8] sm:$0xff]  ;;  %s204_s9 = scalar_lea.vmem %s711_s3, %s723_s17 }
  0x2e   : > { %v297_v59 = vld [vmem:[%s708_s0 + $0x18] sm:$0xff]  ;;  %v296_v61 = vld [vmem:[%s708_s0 + $0x10] sm:$0xff] }
  0x30   : > { %256 = vmax.xlane.f32.xlu1 %v255_v9 }
  0x31   : > { %234 = vadd.xlane.f32.xlu0 %v233_v10  ;;  %v228_v18 = vld [vmem:[#allocation2 + $0x10] sm:$0xff]  ;;  %v226_v19 = vld [vmem:[#allocation2] sm:$0xff] }
  0x32   : > { %v227_v25 = vld [vmem:[#allocation2 + $0x8] sm:$0xff]  ;;  %v229_v30 = vld [vmem:[#allocation2 + $0x18] sm:$0xff] }
  0x33   : > { %v251_v24 = vld [vmem:[#allocation3] sm:$0xff]  ;;  %v252_v31 = vld [vmem:[#allocation3 + $0x8] sm:$0xff] }
  0x34   : > { %240 = vadd.xlane.f32.xlu1 %v239_v13  ;;  %v254_v36 = vld [vmem:[#allocation3 + $0x18] sm:$0xff]  ;;  %v253_v37 = vld [vmem:[#allocation3 + $0x10] sm:$0xff] }
  0x35   : > { %259 = vmax.xlane.f32.xlu0 %v258_v14  ;;  %v316_v14 = vstv %s315_s6 }
  0x38   : > { %265 = vmax.xlane.f32.xlu1 %v264_v16 }
  0x39   : > { %262 = vmax.xlane.f32.xlu0 %v261_v17 }
  0xb5   : > { %v238_v20 = vpop.xlane.xlu1 %237 }
  0xb6   : > { %v244_v21 = vadd.f32 %v238_v20, %v228_v18  ;;  %v232_v22 = vpop.xlane.xlu0 %231 }
  0xb7   : > { %v242_v23 = vadd.f32 %v232_v22, %v226_v19 }
  0xb8   : > { %249 = vst.msk [vmem:[#allocation2 + $0x10] sm:$0xff] %vm209_vm0, %v244_v21 }
  0xb9   : > { %247 = vst.msk [vmem:[#allocation2] sm:$0xff] %vm209_vm0, %v242_v23  ;;  %v257_v26 = vpop.xlane.xlu1 %256 }
  0xba   : > { %v267_v27 = vmax.f32 %v251_v24, %v257_v26  ;;  %v235_v28 = vpop.xlane.xlu0 %234 }
  0xbb   : > { %v243_v29 = vadd.f32 %v235_v28, %v227_v25 }
  0xbc   : > { %271 = vst.msk [vmem:[#allocation3] sm:$0xff] %vm209_vm0, %v267_v27 }
  0xbd   : > { %248 = vst.msk [vmem:[#allocation2 + $0x8] sm:$0xff] %vm209_vm0, %v243_v29  ;;  %v241_v32 = vpop.xlane.xlu1 %240 }
  0xbe   : > { %v245_v33 = vadd.f32 %v241_v32, %v229_v30  ;;  %v260_v34 = vpop.xlane.xlu0 %259 }
  0xbf   : > { %v268_v35 = vmax.f32 %v252_v31, %v260_v34  ;;  %v280_v50 = vld [vmem:[#allocation2 + $0x10] sm:$0xff] }
  0xc0   : > { %250 = vst.msk [vmem:[#allocation2 + $0x18] sm:$0xff] %vm209_vm0, %v245_v33  ;;  %v278_v39 = vld [vmem:[#allocation2] sm:$0xff]  ;;  %v284_v55 = vmul.f32 0.00390625, %v280_v50 }
  0xc1   : > { %272 = vst.msk [vmem:[#allocation3 + $0x8] sm:$0xff] %vm209_vm0, %v268_v35  ;;  %v266_v38 = vpop.xlane.xlu1 %265  ;;  %v282_v45 = vmul.f32 0.00390625, %v278_v39 }
  0xc2   : > { %v270_v40 = vmax.f32 %v254_v36, %v266_v38  ;;  %v263_v41 = vpop.xlane.xlu0 %262 }
  0xc3   : > { %v269_v42 = vmax.f32 %v253_v37, %v263_v41  ;;  %v286_v43 = vld [vmem:[#allocation3] sm:$0xff] }
  0xc4   : > { %v279_v44 = vld [vmem:[#allocation2 + $0x8] sm:$0xff]  ;;  %274 = vst.msk [vmem:[#allocation3 + $0x18] sm:$0xff] %vm209_vm0, %v270_v40  ;;  %v290_v47 = vadd.f32 %v286_v43, %v282_v45 }
  0xc5   : > { %273 = vst.msk [vmem:[#allocation3 + $0x10] sm:$0xff] %vm209_vm0, %v269_v42  ;;  %v283_v48 = vmul.f32 0.00390625, %v279_v44 }
  0xc6   : > { %v298_v56 = vmul.f32 %v294_v46, %v290_v47 }
  0xc7   : > { %v281_v49 = vld [vmem:[#allocation2 + $0x18] sm:$0xff] }
  0xc8   : > { %v285_v51 = vmul.f32 0.00390625, %v281_v49  ;;  %v287_v53 = vld [vmem:[#allocation3 + $0x8] sm:$0xff]  ;;  %v302_v1 = vsel %vm209_vm0, %v298_v56, 0.0 }
  0xc9   : > { %v291_v54 = vadd.f32 %v287_v53, %v283_v48 }
  0xcb   : > { %v299_v57 = vmul.f32 %v295_v52, %v291_v54  ;;  %v289_v58 = vld [vmem:[#allocation3 + $0x18] sm:$0xff] }
  0xcc   : > { %v293_v60 = vadd.f32 %v289_v58, %v285_v51  ;;  %v288_v62 = vld [vmem:[#allocation3 + $0x10] sm:$0xff] }
  0xcd   : > { %v303_v63 = vsel %vm209_vm0, %v299_v57, 0.0  ;;  %v292_v0 = vadd.f32 %v288_v62, %v284_v55 }
  0xce   : > { %v301_v2 = vmul.f32 %v297_v59, %v293_v60  ;;  %v304_v4 = vadd.f32 %v303_v63, %v302_v1 }
  0xcf   : > { %v300_v3 = vmul.f32 %v296_v61, %v292_v0 }
  0xd0   : > { %v307_v7 = vsel %vm209_vm0, %v301_v2, 0.0 }
  0xd1   : > { %v305_v5 = vsel %vm209_vm0, %v300_v3, 0.0 }
  0xd2   : > { %v306_v6 = vadd.f32 %v305_v5, %v304_v4 }
  0xd4   : > { %v308_v8 = vadd.f32 %v307_v7, %v306_v6 }
  0xd6   : > { %v309_v9 = vrot.slane %v308_v8, 4 }
  0xd8   : > { %v310_v10 = vadd.f32 %v309_v9, %v308_v8 }
  0xda   : > { %v311_v11 = vrot.slane %v310_v10, 2 }
  0xdc   : > { %v312_v12 = vadd.f32 %v311_v11, %v310_v10 }
  0xde   : > { %v313_v13 = vrot.slane %v312_v12, 1 }
  0xe0   : > { %v314_v15 = vadd.f32 %v313_v13, %v312_v12 }
  0xe2   : > { %v317_v16 = vadd.f32 %v316_v14, %v314_v15 }
  0xe4   : > { %v405_v17 = vmul.f32 -1.442695, %v317_v16 }
  0xe6   : > { %468 = vpow2.f32 %v405_v17 }
  0xf3   : > { %v469_v18 = vpop.eup %468 }
  0xf4   : > { %v321_v19 = vadd.f32 1.0, %v469_v18 }
  0xf6   : > { %470 = vrcp.f32 %v321_v19 }
 0x103   : > { %v471_v20 = vpop.eup %470 }
 0x104   : > { %325 = vst.msk [vmem:[%s204_s9] sm:$0x1] %vm324_vm1, %v471_v20 }
 0x105 PF: > { %s17_s19 = sadd.s32 1, %s550_s19   ;;  %s715_s14 = smov %s534_s15 }
 0x106   : > { %p14_p8 = scmp.ge.s32.totalorder %s17_s19, 4   ;;  %s716_s15 = smov %s538_s16 }
 0x107   : > { %s717_s16 = smov %s629_s25  ;;  %s718_s17 = smov %s546_s18 }
 0x108   : > { %s719_s18 = smov %s721_s20  ;;  %16 = sbr.rel (!%p14_p8) target bundleno = 6 (0x6), region = 80 }
 0x10d   :  { %343 = vsyncpa [#allocation6], 1 }
 0x10e   :  { %345 = vsyncpa [#allocation6 + $0x1], 1 }

</bundles_post_ra>
